<compile_context>
chip_gen: v7x
topology: tpu7x:2x2x1
jax: 0.10.0
libtpu: 0.0.40
codegen_flags: <defaults>
</compile_context>

<pallas_src>
import jax
import jax.numpy as jnp
from jax import lax
from jax.experimental import pallas as pl
from jax.experimental.pallas import tpu as pltpu

EPS = 1e-5

# Row layout of the packed (8, 128) auxiliary-parameter buffer.
_ROW_G1, _ROW_BE1 = 0, 1   # BatchNorm1d(64)  gamma / beta
_ROW_G2, _ROW_BE2 = 2, 3   # BatchNorm1d(128) gamma / beta
_ROW_G3, _ROW_BE3 = 4, 5   # BatchNorm1d(64)  gamma / beta
_ROW_B4 = 6                # fc4 bias (2 valid lanes)


def _bn_relu(h, gamma, beta, inv_n):
    """Training-mode BatchNorm1d (biased variance) fused into scale/shift, then ReLU."""
    s1 = jnp.sum(h, axis=0, keepdims=True)          # one pass over h ...
    s2 = jnp.sum(h * h, axis=0, keepdims=True)      # ... for both moments
    mean = s1 * inv_n
    var = jnp.maximum(s2 * inv_n - mean * mean, 0.0)
    scale = gamma * lax.rsqrt(var + EPS)             # EUP rsqrt (free slot)
    shift = beta - mean * scale
    return jnp.maximum(h * scale + shift, 0.0)       # one mul+add per element


def mlp_kernel(x_ref, w1_ref, w2_ref, w3_ref, w4_ref, aux_ref, out_ref):
    inv_n = 1.0 / x_ref.shape[0]                     # static (trace-time) constant

    x = x_ref[...]                                   # (B, len_f)

    # layer 1: fc1 (bias dropped; cancelled by BN) -> BN -> ReLU
    h = jnp.dot(x, w1_ref[...], preferred_element_type=jnp.float32)
    h = _bn_relu(h, aux_ref[_ROW_G1:_ROW_G1 + 1, 0:64],
                 aux_ref[_ROW_BE1:_ROW_BE1 + 1, 0:64], inv_n)

    # layer 2
    h = jnp.dot(h, w2_ref[...], preferred_element_type=jnp.float32)
    h = _bn_relu(h, aux_ref[_ROW_G2:_ROW_G2 + 1, 0:128],
                 aux_ref[_ROW_BE2:_ROW_BE2 + 1, 0:128], inv_n)

    # layer 3
    h = jnp.dot(h, w3_ref[...], preferred_element_type=jnp.float32)
    h = _bn_relu(h, aux_ref[_ROW_G3:_ROW_G3 + 1, 0:64],
                 aux_ref[_ROW_BE3:_ROW_BE3 + 1, 0:64], inv_n)

    # layer 4: fc4 (+ real bias) -> 2-class softmax via sigmoid of lane difference
    logits = (jnp.dot(h, w4_ref[...], preferred_element_type=jnp.float32)
              + aux_ref[_ROW_B4:_ROW_B4 + 1, 0:2])   # (B, 2)
    d = logits[:, 0:1] - logits[:, 1:2]              # (B, 1)
    p0 = 1.0 / (1.0 + jnp.exp(-d))                   # softmax prob of class 0
    p1 = 1.0 / (1.0 + jnp.exp(d))                    # softmax prob of class 1
    out_ref[...] = jnp.concatenate([p0, p1], axis=-1)


def pack_aux(params):
    """Pack the tiny per-feature vectors into one (8,128) f32 buffer (one DMA)."""
    aux = jnp.zeros((8, 128), jnp.float32)
    aux = aux.at[_ROW_G1, :64].set(params["g1"])
    aux = aux.at[_ROW_BE1, :64].set(params["be1"])
    aux = aux.at[_ROW_G2, :128].set(params["g2"])
    aux = aux.at[_ROW_BE2, :128].set(params["be2"])
    aux = aux.at[_ROW_G3, :64].set(params["g3"])
    aux = aux.at[_ROW_BE3, :64].set(params["be3"])
    aux = aux.at[_ROW_B4, :2].set(params["b4"])
    return aux


def neural_network_forward(x, params):
    """x: (B, len_f) float32.  params: dict of weights (see init_params)."""
    B = x.shape[0]
    aux = pack_aux(params)
    vmem_spec = pl.BlockSpec(memory_space=pltpu.MemorySpace.VMEM)

    return pl.pallas_call(
        mlp_kernel,
        out_shape=jax.ShapeDtypeStruct((B, 2), jnp.float32),
        in_specs=[vmem_spec] * 6,
        out_specs=vmem_spec,
    )(x, params["w1"], params["w2"], params["w3"], params["w4"], aux)


def init_params(key, len_f):
    """Parameter init matching the PyTorch module's shapes.

    PyTorch Linear stores weight as (out, in); here we keep the transpose
    (in, out) so the kernel computes x @ W directly.  b1..b3 are created
    (and used by the pure-JAX reference) but are mathematically dead under
    training-mode BatchNorm, so the kernel never receives them.
    """
    dims = [(len_f, 64), (64, 128), (128, 64), (64, 2)]
    params = {}
    keys = jax.random.split(key, len(dims))
    for i, ((fin, fout), k) in enumerate(zip(dims, keys), start=1):
        bound = 1.0 / jnp.sqrt(jnp.float32(fin))
        kw, kb = jax.random.split(k)
        params[f"w{i}"] = jax.random.uniform(
            kw, (fin, fout), jnp.float32, minval=-bound, maxval=bound)
        params[f"b{i}"] = jax.random.uniform(
            kb, (fout,), jnp.float32, minval=-bound, maxval=bound)
    # BatchNorm1d affine params: gamma=1, beta=0 (PyTorch default init).
    for i, n in zip((1, 2, 3), (64, 128, 64)):
        params[f"g{i}"] = jnp.ones((n,), jnp.float32)
        params[f"be{i}"] = jnp.zeros((n,), jnp.float32)
    return params


def reference_forward(x, params):
    """Pure-JAX reference (includes b1..b3, two-pass BN, full softmax)."""
    def bn_relu(h, g, b):
        mean = jnp.mean(h, axis=0, keepdims=True)
        var = jnp.mean((h - mean) ** 2, axis=0, keepdims=True)
        return jnp.maximum(g * (h - mean) / jnp.sqrt(var + EPS) + b, 0.0)

    h = bn_relu(x @ params["w1"] + params["b1"], params["g1"], params["be1"])
    h = bn_relu(h @ params["w2"] + params["b2"], params["g2"], params["be2"])
    h = bn_relu(h @ params["w3"] + params["b3"], params["g3"], params["be3"])
    logits = h @ params["w4"] + params["b4"]
    return jax.nn.softmax(logits, axis=-1)


if __name__ == "__main__":
    key = jax.random.PRNGKey(0)
    k_x, k_p = jax.random.split(key)

    batch, len_f = 8, 10  # e.g. the churn dataset after the column drops
    x = jax.random.normal(k_x, (batch, len_f), jnp.float32)
    params = init_params(k_p, len_f)

    out = neural_network_forward(x, params)
    out = jax.block_until_ready(out)

    ref = reference_forward(x, params)
    assert out.shape == (batch, 2)
    assert jnp.allclose(out, ref, atol=1e-5, rtol=1e-5), "mismatch vs JAX reference"
    assert jnp.allclose(jnp.sum(out, axis=-1), 1.0, atol=1e-5), "softmax rows must sum to 1"

    print("KERNEL_OK")
</pallas_src>

<mosaic_0001>
module attributes {stable_mosaic.version = 11 : i64} {
  func.func @mlp_kernel(%arg0: memref<8x10xf32, #tpu.memory_space<vmem>>, %arg1: memref<10x64xf32, #tpu.memory_space<vmem>>, %arg2: memref<64x128xf32, #tpu.memory_space<vmem>>, %arg3: memref<128x64xf32, #tpu.memory_space<vmem>>, %arg4: memref<64x2xf32, #tpu.memory_space<vmem>>, %arg5: memref<8x128xf32, #tpu.memory_space<vmem>>, %arg6: memref<8x2xf32, #tpu.memory_space<vmem>>) attributes {dimension_semantics = [], scalar_prefetch = 0 : i64, scratch_operands = 0 : i64, tpu.core_type = #tpu.core_type<tc>} {
    %c0 = arith.constant 0 : index
    %c0_0 = arith.constant 0 : index
    %0 = vector.load %arg0[%c0, %c0_0] : memref<8x10xf32, #tpu.memory_space<vmem>>, vector<8x10xf32>
    %c0_1 = arith.constant 0 : index
    %c0_2 = arith.constant 0 : index
    %1 = vector.load %arg1[%c0_1, %c0_2] : memref<10x64xf32, #tpu.memory_space<vmem>>, vector<10x64xf32>
    %cst = arith.constant dense<0.000000e+00> : vector<8x64xf32>
    %2 = tpu.matmul %0, %1, %cst {dimension_numbers = #tpu.dot_dimension_numbers<[1], [0], [0], [1], [0, 0, 1, 1], [], []>} : vector<8x10xf32>, vector<10x64xf32>, vector<8x64xf32> -> vector<8x64xf32>
    %c0_3 = arith.constant 0 : index
    %c0_4 = arith.constant 0 : index
    %3 = vector.load %arg5[%c0_3, %c0_4] : memref<8x128xf32, #tpu.memory_space<vmem>>, vector<1x64xf32>
    %c1 = arith.constant 1 : index
    %c0_5 = arith.constant 0 : index
    %4 = vector.load %arg5[%c1, %c0_5] : memref<8x128xf32, #tpu.memory_space<vmem>>, vector<1x64xf32>
    %cst_6 = arith.constant dense<0.000000e+00> : vector<64xf32>
    %5 = vector.multi_reduction <add>, %2, %cst_6 [0] : vector<8x64xf32> to vector<64xf32>
    %6 = vector.shape_cast %5 : vector<64xf32> to vector<1x64xf32>
    %7 = arith.mulf %2, %2 : vector<8x64xf32>
    %cst_7 = arith.constant dense<0.000000e+00> : vector<64xf32>
    %8 = vector.multi_reduction <add>, %7, %cst_7 [0] : vector<8x64xf32> to vector<64xf32>
    %9 = vector.shape_cast %8 : vector<64xf32> to vector<1x64xf32>
    %cst_8 = arith.constant 1.250000e-01 : f32
    %10 = vector.broadcast %cst_8 : f32 to vector<1x64xf32>
    %11 = arith.mulf %6, %10 : vector<1x64xf32>
    %cst_9 = arith.constant 1.250000e-01 : f32
    %12 = vector.broadcast %cst_9 : f32 to vector<1x64xf32>
    %13 = arith.mulf %9, %12 : vector<1x64xf32>
    %14 = arith.mulf %11, %11 : vector<1x64xf32>
    %15 = arith.subf %13, %14 : vector<1x64xf32>
    %cst_10 = arith.constant 0.000000e+00 : f32
    %16 = vector.broadcast %cst_10 : f32 to vector<1x64xf32>
    %17 = arith.maximumf %15, %16 : vector<1x64xf32>
    %cst_11 = arith.constant 9.99999974E-6 : f32
    %18 = vector.broadcast %cst_11 : f32 to vector<1x64xf32>
    %19 = arith.addf %17, %18 : vector<1x64xf32>
    %20 = math.rsqrt %19 : vector<1x64xf32>
    %21 = arith.mulf %3, %20 : vector<1x64xf32>
    %22 = arith.mulf %11, %21 : vector<1x64xf32>
    %23 = arith.subf %4, %22 : vector<1x64xf32>
    %24 = vector.broadcast %21 : vector<1x64xf32> to vector<8x64xf32>
    %25 = arith.mulf %2, %24 : vector<8x64xf32>
    %26 = vector.broadcast %23 : vector<1x64xf32> to vector<8x64xf32>
    %27 = arith.addf %25, %26 : vector<8x64xf32>
    %cst_12 = arith.constant 0.000000e+00 : f32
    %28 = vector.broadcast %cst_12 : f32 to vector<8x64xf32>
    %29 = arith.maximumf %27, %28 : vector<8x64xf32>
    %c0_13 = arith.constant 0 : index
    %c0_14 = arith.constant 0 : index
    %30 = vector.load %arg2[%c0_13, %c0_14] : memref<64x128xf32, #tpu.memory_space<vmem>>, vector<64x128xf32>
    %cst_15 = arith.constant dense<0.000000e+00> : vector<8x128xf32>
    %31 = tpu.matmul %29, %30, %cst_15 {dimension_numbers = #tpu.dot_dimension_numbers<[1], [0], [0], [1], [0, 0, 1, 1], [], []>} : vector<8x64xf32>, vector<64x128xf32>, vector<8x128xf32> -> vector<8x128xf32>
    %c2 = arith.constant 2 : index
    %c0_16 = arith.constant 0 : index
    %32 = vector.load %arg5[%c2, %c0_16] : memref<8x128xf32, #tpu.memory_space<vmem>>, vector<1x128xf32>
    %c3 = arith.constant 3 : index
    %c0_17 = arith.constant 0 : index
    %33 = vector.load %arg5[%c3, %c0_17] : memref<8x128xf32, #tpu.memory_space<vmem>>, vector<1x128xf32>
    %cst_18 = arith.constant dense<0.000000e+00> : vector<128xf32>
    %34 = vector.multi_reduction <add>, %31, %cst_18 [0] : vector<8x128xf32> to vector<128xf32>
    %35 = vector.shape_cast %34 : vector<128xf32> to vector<1x128xf32>
    %36 = arith.mulf %31, %31 : vector<8x128xf32>
    %cst_19 = arith.constant dense<0.000000e+00> : vector<128xf32>
    %37 = vector.multi_reduction <add>, %36, %cst_19 [0] : vector<8x128xf32> to vector<128xf32>
    %38 = vector.shape_cast %37 : vector<128xf32> to vector<1x128xf32>
    %cst_20 = arith.constant 1.250000e-01 : f32
    %39 = vector.broadcast %cst_20 : f32 to vector<1x128xf32>
    %40 = arith.mulf %35, %39 : vector<1x128xf32>
    %cst_21 = arith.constant 1.250000e-01 : f32
    %41 = vector.broadcast %cst_21 : f32 to vector<1x128xf32>
    %42 = arith.mulf %38, %41 : vector<1x128xf32>
    %43 = arith.mulf %40, %40 : vector<1x128xf32>
    %44 = arith.subf %42, %43 : vector<1x128xf32>
    %cst_22 = arith.constant 0.000000e+00 : f32
    %45 = vector.broadcast %cst_22 : f32 to vector<1x128xf32>
    %46 = arith.maximumf %44, %45 : vector<1x128xf32>
    %cst_23 = arith.constant 9.99999974E-6 : f32
    %47 = vector.broadcast %cst_23 : f32 to vector<1x128xf32>
    %48 = arith.addf %46, %47 : vector<1x128xf32>
    %49 = math.rsqrt %48 : vector<1x128xf32>
    %50 = arith.mulf %32, %49 : vector<1x128xf32>
    %51 = arith.mulf %40, %50 : vector<1x128xf32>
    %52 = arith.subf %33, %51 : vector<1x128xf32>
    %53 = vector.broadcast %50 : vector<1x128xf32> to vector<8x128xf32>
    %54 = arith.mulf %31, %53 : vector<8x128xf32>
    %55 = vector.broadcast %52 : vector<1x128xf32> to vector<8x128xf32>
    %56 = arith.addf %54, %55 : vector<8x128xf32>
    %cst_24 = arith.constant 0.000000e+00 : f32
    %57 = vector.broadcast %cst_24 : f32 to vector<8x128xf32>
    %58 = arith.maximumf %56, %57 : vector<8x128xf32>
    %c0_25 = arith.constant 0 : index
    %c0_26 = arith.constant 0 : index
    %59 = vector.load %arg3[%c0_25, %c0_26] : memref<128x64xf32, #tpu.memory_space<vmem>>, vector<128x64xf32>
    %cst_27 = arith.constant dense<0.000000e+00> : vector<8x64xf32>
    %60 = tpu.matmul %58, %59, %cst_27 {dimension_numbers = #tpu.dot_dimension_numbers<[1], [0], [0], [1], [0, 0, 1, 1], [], []>} : vector<8x128xf32>, vector<128x64xf32>, vector<8x64xf32> -> vector<8x64xf32>
    %c4 = arith.constant 4 : index
    %c0_28 = arith.constant 0 : index
    %61 = vector.load %arg5[%c4, %c0_28] : memref<8x128xf32, #tpu.memory_space<vmem>>, vector<1x64xf32>
    %c5 = arith.constant 5 : index
    %c0_29 = arith.constant 0 : index
    %62 = vector.load %arg5[%c5, %c0_29] : memref<8x128xf32, #tpu.memory_space<vmem>>, vector<1x64xf32>
    %cst_30 = arith.constant dense<0.000000e+00> : vector<64xf32>
    %63 = vector.multi_reduction <add>, %60, %cst_30 [0] : vector<8x64xf32> to vector<64xf32>
    %64 = vector.shape_cast %63 : vector<64xf32> to vector<1x64xf32>
    %65 = arith.mulf %60, %60 : vector<8x64xf32>
    %cst_31 = arith.constant dense<0.000000e+00> : vector<64xf32>
    %66 = vector.multi_reduction <add>, %65, %cst_31 [0] : vector<8x64xf32> to vector<64xf32>
    %67 = vector.shape_cast %66 : vector<64xf32> to vector<1x64xf32>
    %cst_32 = arith.constant 1.250000e-01 : f32
    %68 = vector.broadcast %cst_32 : f32 to vector<1x64xf32>
    %69 = arith.mulf %64, %68 : vector<1x64xf32>
    %cst_33 = arith.constant 1.250000e-01 : f32
    %70 = vector.broadcast %cst_33 : f32 to vector<1x64xf32>
    %71 = arith.mulf %67, %70 : vector<1x64xf32>
    %72 = arith.mulf %69, %69 : vector<1x64xf32>
    %73 = arith.subf %71, %72 : vector<1x64xf32>
    %cst_34 = arith.constant 0.000000e+00 : f32
    %74 = vector.broadcast %cst_34 : f32 to vector<1x64xf32>
    %75 = arith.maximumf %73, %74 : vector<1x64xf32>
    %cst_35 = arith.constant 9.99999974E-6 : f32
    %76 = vector.broadcast %cst_35 : f32 to vector<1x64xf32>
    %77 = arith.addf %75, %76 : vector<1x64xf32>
    %78 = math.rsqrt %77 : vector<1x64xf32>
    %79 = arith.mulf %61, %78 : vector<1x64xf32>
    %80 = arith.mulf %69, %79 : vector<1x64xf32>
    %81 = arith.subf %62, %80 : vector<1x64xf32>
    %82 = vector.broadcast %79 : vector<1x64xf32> to vector<8x64xf32>
    %83 = arith.mulf %60, %82 : vector<8x64xf32>
    %84 = vector.broadcast %81 : vector<1x64xf32> to vector<8x64xf32>
    %85 = arith.addf %83, %84 : vector<8x64xf32>
    %cst_36 = arith.constant 0.000000e+00 : f32
    %86 = vector.broadcast %cst_36 : f32 to vector<8x64xf32>
    %87 = arith.maximumf %85, %86 : vector<8x64xf32>
    %c0_37 = arith.constant 0 : index
    %c0_38 = arith.constant 0 : index
    %88 = vector.load %arg4[%c0_37, %c0_38] : memref<64x2xf32, #tpu.memory_space<vmem>>, vector<64x2xf32>
    %cst_39 = arith.constant dense<0.000000e+00> : vector<8x2xf32>
    %89 = tpu.matmul %87, %88, %cst_39 {dimension_numbers = #tpu.dot_dimension_numbers<[1], [0], [0], [1], [0, 0, 1, 1], [], []>} : vector<8x64xf32>, vector<64x2xf32>, vector<8x2xf32> -> vector<8x2xf32>
    %c6 = arith.constant 6 : index
    %c0_40 = arith.constant 0 : index
    %90 = vector.load %arg5[%c6, %c0_40] : memref<8x128xf32, #tpu.memory_space<vmem>>, vector<1x2xf32>
    %91 = vector.broadcast %90 : vector<1x2xf32> to vector<8x2xf32>
    %92 = arith.addf %89, %91 : vector<8x2xf32>
    %93 = vector.extract_strided_slice %92 {offsets = [0, 0], sizes = [8, 1], strides = [1, 1]} : vector<8x2xf32> to vector<8x1xf32>
    %94 = vector.extract_strided_slice %92 {offsets = [0, 1], sizes = [8, 1], strides = [1, 1]} : vector<8x2xf32> to vector<8x1xf32>
    %95 = arith.subf %93, %94 : vector<8x1xf32>
    %cst_41 = arith.constant 0.000000e+00 : f32
    %96 = vector.broadcast %cst_41 : f32 to vector<8x1xf32>
    %97 = arith.subf %96, %95 : vector<8x1xf32>
    %98 = math.exp %97 : vector<8x1xf32>
    %cst_42 = arith.constant 1.000000e+00 : f32
    %99 = vector.broadcast %cst_42 : f32 to vector<8x1xf32>
    %100 = arith.addf %99, %98 : vector<8x1xf32>
    %cst_43 = arith.constant 1.000000e+00 : f32
    %101 = vector.broadcast %cst_43 : f32 to vector<8x1xf32>
    %102 = arith.divf %101, %100 : vector<8x1xf32>
    %103 = math.exp %95 : vector<8x1xf32>
    %cst_44 = arith.constant 1.000000e+00 : f32
    %104 = vector.broadcast %cst_44 : f32 to vector<8x1xf32>
    %105 = arith.addf %104, %103 : vector<8x1xf32>
    %cst_45 = arith.constant 1.000000e+00 : f32
    %106 = vector.broadcast %cst_45 : f32 to vector<8x1xf32>
    %107 = arith.divf %106, %105 : vector<8x1xf32>
    %108 = tpu.concatenate %102, %107 in 1 : vector<8x1xf32>, vector<8x1xf32> -> vector<8x2xf32>
    %c0_46 = arith.constant 0 : index
    %c0_47 = arith.constant 0 : index
    %109 = vector.load %arg6[%c0_46, %c0_47] : memref<8x2xf32, #tpu.memory_space<vmem>>, vector<8x2xf32>
    tpu.vector_store %arg6[%c0_46, %c0_47], %108 {strides = array<i32>} : memref<8x2xf32, #tpu.memory_space<vmem>>, vector<8x2xf32>,
    return
  }
}

</mosaic_0001>

<bundles_post_ra>
// kernel: tpu_custom_call.1
= control target key start
LH: loop header
LB: loop body
LE: loop exit
PB: predicated region body
PF: predicated region fallthrough
CT: control target
= control target key end

     0   :  { %vm30_vm0 = vcmask 1041408   ;;  %v693_v0 = vmov 0.0|0.0   ;;  %vm694_vm1 = vmmov 1   ;;  %vm695_vm3 = vmmov 0   ;;  %s697_s22 = smov 127   ;;  %s698_s23 = smov 1   ;;  %s902_s1 = inlined_call_operand.vmem [shape: f32[10,64], index: 1, kind: input, shape index: {}]   ;;  %s903_s0 = inlined_call_operand.vmem [shape: f32[8,10], index: 0, kind: input, shape index: {}]   ;;  %s904_s2 = inlined_call_operand.vmem [shape: f32[64,128], index: 2, kind: input, shape index: {}]   ;;  %s905_s5 = inlined_call_operand.vmem [shape: f32[8,128], index: 5, kind: input, shape index: {}]   ;;  %s906_s3 = inlined_call_operand.vmem [shape: f32[128,64], index: 3, kind: input, shape index: {}]   ;;  %s907_s4 = inlined_call_operand.vmem [shape: f32[64,2], index: 4, kind: input, shape index: {}]   ;;  %s908_s6 = inlined_call_operand.vmem [shape: f32[8,2], index: 6, kind: output, shape index: {}]  }
   0x1   :  { %621 = vmatprep.subr.bf16.mxu0 %v693_v0  ;;  %v24_v1 = vld [vmem:[%s902_s1] sm:$0xff]  ;;  %v25_v2 = vld [vmem:[%s902_s1 + $0x8] sm:$0x3]  ;;  %vm623_vm2 = vmpackc.low %vm30_vm0, %vm694_vm1  ;;  %625 = vmatprep.subr.bf16.mxu1 %v693_v0  ;;  %v696_v4 = vmov 0.0   ;;  %vm26_vm4 = vcmask 80896   ;;  %vm106_vm5 = vcmask 523264   ;;  %v132_v41 = vlaneseq }
   0x2   :  { %v622_v3 = vpack.c.bf16 %v25_v2, %v24_v1  ;;  %545 = vmatprep.mubr.msk.f32.mxu0 %vm695_vm3, %v696_v4  ;;  %564 = vmatprep.mubr.msk.f32.mxu1 %vm695_vm3, %v696_v4  ;;  %v23_v5 = vld [vmem:[%s903_s0] sm:$0xff]  ;;  %v144_v7 = vld [vmem:[%s904_s2 + $0x8] sm:$0xff]  ;;  %v145_v9 = vld [vmem:[%s904_s2 + $0x10] sm:$0xff]  ;;  %vm490_vm6 = vcmask 7168   ;;  %vm492_vm7 = vcmask 15360  }
   0x3   :  { %v143_v6 = vld [vmem:[%s904_s2] sm:$0xff]  ;;  %v146_v10 = vld [vmem:[%s904_s2 + $0x18] sm:$0xff]  ;;  %v148_v13 = vld [vmem:[%s904_s2 + $0x28] sm:$0xff]  ;;  %v133_v42 = vshrl.u32 %v132_v41, 7 }
   0x4   :  { %624 = vmatpush3.bf16.msk.msra.mxu0 %vm623_vm2, %v622_v3  ;;  %v626_v8 = vpack.c.bf16 %v144_v7, %v143_v6  ;;  %v629_v11 = vpack.c.bf16 %v146_v10, %v145_v9  ;;  %v147_v12 = vld [vmem:[%s904_s2 + $0x20] sm:$0xff]  ;;  %v149_v15 = vld [vmem:[%s904_s2 + $0x30] sm:$0xff]  ;;  %v150_v16 = vld [vmem:[%s904_s2 + $0x38] sm:$0xff] }
   0x5   :  { %637 = vmatprep.subr.bf16.mxu0 %v693_v0  ;;  %v632_v14 = vpack.c.bf16 %v148_v13, %v147_v12  ;;  %v635_v17 = vpack.c.bf16 %v150_v16, %v149_v15  ;;  %v104_v43 = vld [vmem:[%s905_s5] sm:$0x1]  ;;  %v785_v44 = vsub.s32 0, %v133_v42  ;;  %v105_v47 = vld [vmem:[%s905_s5 + $0x1] sm:$0x1]  ;;  %v261_v56 = vld [vmem:[%s906_s3 + $0x8] sm:$0xff] }
   0x6   :  { %627 = vmatpush3.bf16.msra.mxu1 %v626_v8  ;;  %v260_v55 = vld [vmem:[%s906_s3] sm:$0xff]  ;;  %v262_v58 = vld [vmem:[%s906_s3 + $0x10] sm:$0xff]  ;;  %v263_v59 = vld [vmem:[%s906_s3 + $0x18] sm:$0xff] }
   0x7   :  { %546 = vmatmul.mubr.msk.f32.vlgmr.msra.gmra.mrb[0].mxu0 %vm26_vm4, %v23_v5  ;;  %628 = vmatprep.subr.bf16.mxu1 %v693_v0  ;;  %v638_v57 = vpack.c.bf16 %v261_v56, %v260_v55  ;;  %v641_v60 = vpack.c.bf16 %v263_v59, %v262_v58  ;;  %v264_v61 = vld [vmem:[%s906_s3 + $0x20] sm:$0xff]  ;;  %v265_v62 = vld [vmem:[%s906_s3 + $0x28] sm:$0xff]  ;;  %v266_v1 = vld [vmem:[%s906_s3 + $0x30] sm:$0xff] }
   0x8   :  { %599 = vmatprep.mubr.msk.f32.mxu0 %vm695_vm3, %v696_v4  ;;  %v644_v63 = vpack.c.bf16 %v265_v62, %v264_v61  ;;  %v267_v2 = vld [vmem:[%s906_s3 + $0x38] sm:$0xff]  ;;  %v269_v5 = vld [vmem:[%s906_s3 + $0x48] sm:$0xff]  ;;  %v270_v7 = vld [vmem:[%s906_s3 + $0x50] sm:$0xff] }
   0x9   :  { %639 = vmatpush3.bf16.msra.mxu0 %v638_v57  ;;  %v647_v3 = vpack.c.bf16 %v267_v2, %v266_v1  ;;  %v271_v8 = vld [vmem:[%s906_s3 + $0x58] sm:$0xff]  ;;  %v272_v10 = vld [vmem:[%s906_s3 + $0x60] sm:$0xff]  ;;  %v274_v13 = vld [vmem:[%s906_s3 + $0x70] sm:$0xff] }
   0xa   :  { %630 = vmatpush3.bf16.msra.mxu1 %v629_v11  ;;  %640 = vmatprep.subr.bf16.mxu0 %v693_v0  ;;  %v653_v9 = vpack.c.bf16 %v271_v8, %v270_v7  ;;  %v273_v11 = vld [vmem:[%s906_s3 + $0x68] sm:$0xff]  ;;  %v388_v55 = vld [vmem:[%s907_s4 + $0x20] sm:$0xff]  ;;  %v390_v58 = vld [vmem:[%s907_s4 + $0x30] sm:$0xff] }
   0xb   :  { %631 = vmatprep.subr.bf16.mxu1 %v693_v0  ;;  %v656_v12 = vpack.c.bf16 %v273_v11, %v272_v10  ;;  %v389_v56 = vld [vmem:[%s907_s4 + $0x28] sm:$0xff]  ;;  %v391_v59 = vld [vmem:[%s907_s4 + $0x38] sm:$0xff] }
   0xc   :  { %v668_v57 = vpack.c.bf16 %v389_v56, %v388_v55 }
   0xd   :  { %642 = vmatpush3.bf16.msra.mxu0 %v641_v60  ;;  %v671_v60 = vpack.c.bf16 %v391_v59, %v390_v58 }
   0xe   :  { %633 = vmatpush3.bf16.msra.mxu1 %v632_v14  ;;  %643 = vmatprep.subr.bf16.mxu0 %v693_v0  ;;  %v275_v14 = vld [vmem:[%s906_s3 + $0x78] sm:$0xff] }
   0xf   :  { %634 = vmatprep.subr.bf16.mxu1 %v693_v0  ;;  %v659_v15 = vpack.c.bf16 %v275_v14, %v274_v13 }
  0x11   :  { %645 = vmatpush3.bf16.msra.mxu0 %v644_v63 }
  0x12   :  { %636 = vmatpush3.bf16.msra.mxu1 %v635_v17  ;;  %646 = vmatprep.subr.bf16.mxu0 %v693_v0 }
  0x13   :  { %661 = vmatprep.subr.bf16.mxu1 %v693_v0 }
  0x15   :  { %648 = vmatpush3.bf16.msra.mxu0 %v647_v3 }
  0x16   :  { %649 = vmatprep.subr.bf16.mxu0 %v693_v0 }
  0xda   :  { %v100_v18 = vpop.f32.mrb[0].mxu0 }
  0xdb   :  { %v107_v19 = vsel %vm106_vm5, %v100_v18, 0.0  ;;  %v114_v20 = vmul.f32 %v100_v18, %v100_v18  ;;  %v547_v21 = vpop.f32.mrb[1].mxu0 }
  0xdc   :  { %v108_v22 = vrot.slane %v107_v19, 4 }
  0xdd   :  { %v115_v23 = vsel %vm106_vm5, %v114_v20, 0.0 }
  0xde   :  { %v109_v24 = vadd.f32 %v108_v22, %v107_v19  ;;  %v116_v25 = vrot.slane %v115_v23, 4 }
  0xe0   :  { %v110_v26 = vrot.slane %v109_v24, 2  ;;  %v117_v27 = vadd.f32 %v116_v25, %v115_v23 }
  0xe2   :  { %v111_v28 = vadd.f32 %v110_v26, %v109_v24  ;;  %v118_v29 = vrot.slane %v117_v27, 2 }
  0xe4   :  { %v112_v30 = vrot.slane %v111_v28, 1  ;;  %v119_v31 = vadd.f32 %v118_v29, %v117_v27 }
  0xe6   :  { %v113_v32 = vadd.f32 %v112_v30, %v111_v28  ;;  %v120_v33 = vrot.slane %v119_v31, 1 }
  0xe8   :  { %v121_v34 = vadd.f32 %v120_v33, %v119_v31  ;;  %v122_v35 = vmul.f32 0.125, %v113_v32 }
  0xea   :  { %v123_v36 = vmul.f32 0.125, %v121_v34  ;;  %v124_v37 = vmul.f32 %v122_v35, %v122_v35 }
  0xec   :  { %v125_v38 = vsub.f32 %v123_v36, %v124_v37  ;;  %v224_v37 = vld [vmem:[%s905_s5 + $0x2] sm:$0x1] }
  0xee   :  { %v126_v39 = vmax.f32 %v125_v38, 0.0 }
  0xf0   :  { %v127_v40 = vadd.f32 1e-05, %v126_v39 }
  0xf2   :  { %679 = vrsqrt.f32 %v127_v40  ;;  %v225_v40 = vld [vmem:[%s905_s5 + $0x3] sm:$0x1] }
  0xfc   :  { %v680_v45 = vpop.eup %679 }
  0xfd   :  { %v129_v46 = vmul.f32 %v680_v45, %v104_v43 }
  0xff   :  { %v130_v48 = vmul.f32 %v129_v46, %v122_v35  ;;  %v135_v49 = vrot.slane %v129_v46, %v785_v44 }
 0x101   :  { %v131_v50 = vsub.f32 %v105_v47, %v130_v48  ;;  %v136_v51 = vmul.f32 %v135_v49, %v100_v18  ;;  %v384_v49 = vld [vmem:[%s907_s4] sm:$0xff] }
 0x103   :  { %v140_v52 = vrot.slane %v131_v50, %v785_v44  ;;  %v385_v50 = vld [vmem:[%s907_s4 + $0x8] sm:$0xff] }
 0x105   :  { %v141_v53 = vadd.f32 %v140_v52, %v136_v51  ;;  %v662_v51 = vpack.c.bf16 %v385_v50, %v384_v49  ;;  %v386_v52 = vld [vmem:[%s907_s4 + $0x10] sm:$0xff] }
 0x107   :  { %v142_v54 = vmax.f32 %v141_v53, 0.0  ;;  %v387_v53 = vld [vmem:[%s907_s4 + $0x18] sm:$0xff] }
 0x109   :  { %565 = vmatmul.mubr.msk.f32.vlgmr.msra.gmra.mrb[0].mxu1 %vm106_vm5, %v142_v54  ;;  %v665_v54 = vpack.c.bf16 %v387_v53, %v386_v52 }
 0x10a   :  { %618 = vmatprep.mubr.msk.f32.mxu1 %vm695_vm3, %v696_v4  ;;  %v268_v4 = vld [vmem:[%s906_s3 + $0x40] sm:$0xff]  ;;  %663 = vmatpush3.bf16.msra.mxu1 %v662_v51 }
 0x10b   :  { %v650_v6 = vpack.c.bf16 %v269_v5, %v268_v4  ;;  %664 = vmatprep.subr.bf16.mxu1 %v693_v0 }
 0x10d   :  { %651 = vmatpush3.bf16.msra.mxu0 %v650_v6 }
 0x10e   :  { %652 = vmatprep.subr.bf16.mxu0 %v693_v0  ;;  %666 = vmatpush3.bf16.msra.mxu1 %v665_v54 }
 0x10f   :  { %667 = vmatprep.subr.bf16.mxu1 %v693_v0 }
 0x111   :  { %654 = vmatpush3.bf16.msra.mxu0 %v653_v9 }
 0x112   :  { %655 = vmatprep.subr.bf16.mxu0 %v693_v0  ;;  %669 = vmatpush3.bf16.msra.mxu1 %v668_v57 }
 0x113   :  { %670 = vmatprep.subr.bf16.mxu1 %v693_v0 }
 0x115   :  { %657 = vmatpush3.bf16.msra.mxu0 %v656_v12 }
 0x116   :  { %658 = vmatprep.subr.bf16.mxu0 %v693_v0  ;;  %672 = vmatpush3.bf16.msra.mxu1 %v671_v60 }
 0x119   :  { %660 = vmatpush3.bf16.msra.mxu0 %v659_v15 }
 0x1dc   :  { %v220_v16 = vpop.f32.mrb[0].mxu1 }
 0x1dd   :  { %v226_v17 = vrot.slane %v220_v16, 4  ;;  %v232_v18 = vmul.f32 %v220_v16, %v220_v16  ;;  %v566_v19 = vpop.f32.mrb[1].mxu1 }
 0x1df   :  { %v227_v20 = vadd.f32 %v226_v17, %v220_v16  ;;  %v233_v21 = vrot.slane %v232_v18, 4 }
 0x1e1   :  { %v228_v22 = vrot.slane %v227_v20, 2  ;;  %v234_v23 = vadd.f32 %v233_v21, %v232_v18 }
 0x1e3   :  { %v229_v24 = vadd.f32 %v228_v22, %v227_v20  ;;  %v235_v25 = vrot.slane %v234_v23, 2  ;;  %v346_v20 = vld [vmem:[%s905_s5 + $0x4] sm:$0x1] }
 0x1e5   :  { %v230_v26 = vrot.slane %v229_v24, 1  ;;  %v236_v27 = vadd.f32 %v235_v25, %v234_v23  ;;  %v347_v23 = vld [vmem:[%s905_s5 + $0x5] sm:$0x1] }
 0x1e7   :  { %v231_v28 = vadd.f32 %v230_v26, %v229_v24  ;;  %v237_v29 = vrot.slane %v236_v27, 1 }
 0x1e9   :  { %v238_v30 = vadd.f32 %v237_v29, %v236_v27  ;;  %v239_v31 = vmul.f32 0.125, %v231_v28 }
 0x1eb   :  { %v240_v32 = vmul.f32 0.125, %v238_v30  ;;  %v241_v33 = vmul.f32 %v239_v31, %v239_v31 }
 0x1ed   :  { %v242_v34 = vsub.f32 %v240_v32, %v241_v33 }
 0x1ef   :  { %v243_v35 = vmax.f32 %v242_v34, 0.0 }
 0x1f1   :  { %v244_v36 = vadd.f32 1e-05, %v243_v35 }
 0x1f3   :  { %681 = vrsqrt.f32 %v244_v36 }
 0x1fd   :  { %v682_v38 = vpop.eup %681 }
 0x1fe   :  { %v246_v39 = vmul.f32 %v682_v38, %v224_v37 }
 0x200   :  { %v247_v41 = vmul.f32 %v246_v39, %v239_v31  ;;  %v252_v42 = vrot.slane %v246_v39, %v785_v44  ;;  %v501_v31 = vld [vmem:[%s905_s5 + $0x6] ss:$0 sm:$0xff] }
 0x202   :  { %v248_v43 = vsub.f32 %v225_v40, %v247_v41  ;;  %v253_v45 = vmul.f32 %v252_v42, %v220_v16 }
 0x204   :  { %v257_v46 = vrot.slane %v248_v43, %v785_v44 }
 0x206   :  { %v258_v47 = vadd.f32 %v257_v46, %v253_v45 }
 0x208   :  { %v259_v48 = vmax.f32 %v258_v47, 0.0 }
 0x20a   :  { %600 = vmatmul.mubr.f32.vlgmr.msra.gmra.mrb[2].mxu0 %v259_v48 }
 0x2dd   :  { %v342_v61 = vpop.f32.mrb[2].mxu0 }
 0x2de   :  { %v348_v62 = vsel %vm106_vm5, %v342_v61, 0.0  ;;  %v355_v63 = vmul.f32 %v342_v61, %v342_v61  ;;  %v601_v1 = vpop.f32.mrb[3].mxu0 }
 0x2df   :  { %v349_v2 = vrot.slane %v348_v62, 4 }
 0x2e0   :  { %v356_v3 = vsel %vm106_vm5, %v355_v63, 0.0 }
 0x2e1   :  { %v350_v4 = vadd.f32 %v349_v2, %v348_v62  ;;  %v357_v0 = vrot.slane %v356_v3, 4 }
 0x2e3   :  { %v351_v5 = vrot.slane %v350_v4, 2  ;;  %v358_v6 = vadd.f32 %v357_v0, %v356_v3 }
 0x2e5   :  { %v352_v7 = vadd.f32 %v351_v5, %v350_v4  ;;  %v359_v8 = vrot.slane %v358_v6, 2 }
 0x2e7   :  { %v353_v9 = vrot.slane %v352_v7, 1  ;;  %v360_v10 = vadd.f32 %v359_v8, %v358_v6 }
 0x2e9   :  { %v354_v11 = vadd.f32 %v353_v9, %v352_v7  ;;  %v361_v12 = vrot.slane %v360_v10, 1 }
 0x2eb   :  { %v362_v13 = vadd.f32 %v361_v12, %v360_v10  ;;  %v363_v14 = vmul.f32 0.125, %v354_v11 }
 0x2ed   :  { %v364_v15 = vmul.f32 0.125, %v362_v13  ;;  %v365_v16 = vmul.f32 %v363_v14, %v363_v14 }
 0x2ef   :  { %v366_v17 = vsub.f32 %v364_v15, %v365_v16 }
 0x2f1   :  { %v367_v18 = vmax.f32 %v366_v17, 0.0 }
 0x2f3   :  { %v368_v19 = vadd.f32 1e-05, %v367_v18 }
 0x2f5   :  { %683 = vrsqrt.f32 %v368_v19 }
 0x2ff   :  { %v684_v21 = vpop.eup %683 }
 0x300   :  { %v370_v22 = vmul.f32 %v684_v21, %v346_v20 }
 0x302   :  { %v371_v24 = vmul.f32 %v370_v22, %v363_v14  ;;  %v376_v25 = vrot.slane %v370_v22, %v785_v44 }
 0x304   :  { %v372_v26 = vsub.f32 %v347_v23, %v371_v24  ;;  %v377_v27 = vmul.f32 %v376_v25, %v342_v61 }
 0x306   :  { %v381_v28 = vrot.slane %v372_v26, %v785_v44 }
 0x308   :  { %v382_v29 = vadd.f32 %v381_v28, %v377_v27 }
 0x30a   :  { %v383_v30 = vmax.f32 %v382_v29, 0.0 }
 0x30c   :  { %619 = vmatmul.mubr.msk.f32.vlgmr.msra.gmra.mrb[2].mxu1 %vm106_vm5, %v383_v30 }
 0x3df   :  { %v466_v32 = vpop.f32.mrb[2].mxu1 }
 0x3e0   :  { %v467_v33 = vadd.f32 %v501_v31, %v466_v32  ;;  %v620_v34 = vpop.f32.mrb[3].mxu1 }
 0x3e2   :  { %471 = vrot.lane.b32.xlu0 %v467_v33, %s697_s22 }
 0x454   :  { %v472_v35 = vpop.permute.xlu0 %471 }
 0x455   :  { %v474_v36 = vsub.f32 %v467_v33, %v472_v35 }
 0x457   :  { %v481_v37 = vmul.f32 1.442695, %v474_v36  ;;  %v475_v40 = vsub.f32 0.0, %v474_v36 }
 0x459   :  { %685 = vpow2.f32 %v481_v37  ;;  %v476_v41 = vmul.f32 1.442695, %v475_v40 }
 0x463   :  { %v686_v38 = vpop.eup %685 }
 0x464   :  { %v483_v39 = vadd.f32 1.0, %v686_v38 }
 0x466   :  { %687 = vrcp.f32 %v483_v39 }
 0x467   :  { %689 = vpow2.f32 %v476_v41 }
 0x470   :  { %v688_v44 = vpop.eup %687 }
 0x471   :  { %487 = vrot.lane.b32.xlu0 %v688_v44, %s698_s23  ;;  %v690_v42 = vpop.eup %689 }
 0x472   :  { %v478_v43 = vadd.f32 1.0, %v690_v42 }
 0x474   :  { %691 = vrcp.f32 %v478_v43 }
 0x47e   :  { %v692_v45 = vpop.eup %691 }
 0x4e3   :  { %v488_v46 = vpop.permute.xlu0 %487 }
 0x4e4   :  { %v491_v47 = vsel %vm490_vm6, %v692_v45, %v488_v46 }
 0x4e5   :  { %493 = vst.msk [vmem:[%s908_s6] sm:$0xff] %vm492_vm7, %v491_v47 }

</bundles_post_ra>
